<compile_context>
chip_gen: v5e
topology: v5e:2x2
jax: 0.10.0
libtpu: 0.0.40
codegen_flags: <defaults>
</compile_context>

<pallas_src>
import numpy as np
import jax
import jax.numpy as jnp
from jax.experimental import pallas as pl
from jax.experimental.pallas import tpu as pltpu

H = 16
W = 16

# ----------------------------------------------------------------------------
# Packed small-weight slab layout (rows = output channels, f32, VMEM-resident).
# ----------------------------------------------------------------------------
_C_GRW_SRC = 0     # (6,3)  Gr weight on the 3 source-image channels
_C_GRB     = 3     # (6,)   Gr bias (image head rows 0:3, seg head rows 3:6)
_C_GSW     = 4     # (3,3)  Gs (segmentation) weight
_C_GSB     = 7     # (3,)   Gs bias
_C_GIW_IMG = 8     # (3,3)  Gi (inpainting) weight on masked reenactment image
_C_GIW_MSK = 11    # (3,)   Gi weight on the target-mask channel
_C_GIB     = 12    # (3,)   Gi bias
_C_GBW_TR  = 13    # (3,3)  Gb (blending) weight on the transfer image
_C_GBW_TGT = 16    # (3,3)  Gb weight on the target image
_C_GBW_MSK = 19    # (3,)   Gb weight on the mask channel
_C_GBB     = 20    # (3,)   Gb bias
_W_SMALL_ROWS = 8
_W_SMALL_COLS = 21


# ----------------------------------------------------------------------------
# Fused FSGAN tensor chain: Normalize -> Gr -> Gs -> masks/masked_fill -> Gi ->
# transfer_mask -> Gb -> tensor2rgb clip.  One pallas_call, everything per tile
# stays in vregs/VMEM.  Per-step refs: (3,T) src, (68,T) hm, (3,T) tgt.
# ----------------------------------------------------------------------------
def _fsgan_fused_kernel(src_ref, hm_ref, tgt_ref, wbig_ref, ws_ref, out_ref):
    f32 = jnp.float32
    bf16 = jnp.bfloat16

    # transforms.Normalize(mean=0.5, std=0.5)
    src = 2.0 * src_ref[...] - 1.0                       # (3, T) source crop
    tgt = 2.0 * tgt_ref[...] - 1.0                       # (3, T) target crop

    ws = ws_ref[...]                                     # (8, 21) resident tiny weights

    def fma(col0, nrows, x):
        # sum_j ws[:nrows, col0+j] (x) x[j, :]  -- f32 VPU broadcast FMAs.
        # K<=3 here, so the MXU (push/drain + bf16 cast passes) is skipped.
        acc = ws[:nrows, col0:col0 + 1] * x[0:1, :]
        for j in range(1, x.shape[0]):
            acc = acc + ws[:nrows, col0 + j:col0 + j + 1] * x[j:j + 1, :]
        return acc

    # Gr stub: the 71-channel cat(source, heatmaps) input is consumed via split
    # weights (never materialized).  Heatmap head (K=68) on the MXU with bf16
    # operands / f32 accumulation; source head + bias on the VPU in f32 so the
    # seg-logit compares below stay exact.
    reen6 = jnp.dot(wbig_ref[...], hm_ref[...].astype(bf16),
                    preferred_element_type=f32)                     # (6, T)
    reen6 = reen6 + fma(_C_GRW_SRC, 6, src) + ws[:6, _C_GRB:_C_GRB + 1]
    reen_img = jnp.tanh(reen6[0:3])                      # reenactment image
    reen_seg = reen6[3:6]                                # reenactment seg logits

    # Gs stub on the full-res target (K=3 -> VPU, f32)
    tgt_seg = fma(_C_GSW, 3, tgt) + ws[:3, _C_GSB:_C_GSB + 1]       # (3, T)

    # argmax(ch) == 1 masks (first-occurrence tie semantics like torch.argmax),
    # f32 compares.
    face_mask = jnp.logical_and(reen_seg[1:2] > reen_seg[0:1],
                                reen_seg[1:2] >= reen_seg[2:3])
    t_mask = jnp.logical_and(tgt_seg[1:2] > tgt_seg[0:1],
                             tgt_seg[1:2] >= tgt_seg[2:3]).astype(f32)

    # masked_fill(~face_mask, -1); Gi's 4-channel cat(img, mask) input is
    # consumed via split weights (no sublane concat).
    img_no_bg = jnp.where(face_mask, reen_img, f32(-1.0))
    completion = jnp.tanh(fma(_C_GIW_IMG, 3, img_no_bg)
                          + ws[:3, _C_GIW_MSK:_C_GIW_MSK + 1] * t_mask
                          + ws[:3, _C_GIB:_C_GIB + 1])              # (3, T)

    # transfer_mask + Gb stub (7-channel cat consumed via split weights)
    transfer = completion * t_mask + tgt * (1.0 - t_mask)
    blend = jnp.tanh(fma(_C_GBW_TR, 3, transfer)
                     + fma(_C_GBW_TGT, 3, tgt)
                     + ws[:3, _C_GBW_MSK:_C_GBW_MSK + 1] * t_mask
                     + ws[:3, _C_GBB:_C_GBB + 1])                   # (3, T)

    # tensor2rgb-style de-normalization; lane-dense full-tile store.
    out_ref[...] = jnp.clip((blend + 1.0) * 0.5, 0.0, 1.0)


def _choose_tile(hw, target=8192):
    """Largest lane-aligned (multiple of 128) divisor of hw up to `target`."""
    best = None
    t = 128
    while t <= min(hw, target):
        if hw % t == 0:
            best = t
        t += 128
    return best if best is not None else hw


# ----------------------------------------------------------------------------
# FSGAN.forward (tensor portion), batched, single fused pallas_call.
# ----------------------------------------------------------------------------
def fsgan_forward(img1, img2, target_heatmaps, params):
    # TODO(synk): face_alignment landmark/bbox extraction, FaceAlignCrop,
    # Resize(256), LandmarksToHeatmaps and the final crop2img (cv2 cubic resize
    # + paste) have no Pallas equivalent; images arrive pre-cropped and
    # heatmaps are provided as an input.
    b, _, h, w = img1.shape
    hw = h * w
    tile = _choose_tile(hw)
    n_p = hw // tile

    # Reshapes only (no HBM transposes) -- batch lives on a grid axis.
    src = img1.reshape(b, 3, hw)
    tgt = img2.reshape(b, 3, hw)
    hm = target_heatmaps.reshape(b, target_heatmaps.shape[1], hw)
    nhm = hm.shape[1]

    w_big = params["w_big"]        # (6, 68) bf16, MXU path (pre-cast on host)
    w_small = params["w_small"]    # (8, 21) f32, VPU path + biases

    act_spec3 = pl.BlockSpec((None, 3, tile), lambda i, p: (i, 0, p))

    out = pl.pallas_call(
        _fsgan_fused_kernel,
        out_shape=jax.ShapeDtypeStruct((b, 3, hw), jnp.float32),
        grid_spec=pltpu.PrefetchScalarGridSpec(
            num_scalar_prefetch=0,
            grid=(b, n_p),
            in_specs=[
                act_spec3,                                                   # src
                pl.BlockSpec((None, nhm, tile), lambda i, p: (i, 0, p)),     # hm
                act_spec3,                                                   # tgt
                pl.BlockSpec((6, nhm), lambda i, p: (0, 0)),                 # resident
                pl.BlockSpec((_W_SMALL_ROWS, _W_SMALL_COLS),
                             lambda i, p: (0, 0)),                          # resident
            ],
            out_specs=pl.BlockSpec((None, 3, tile), lambda i, p: (i, 0, p)),
        ),
        # Both axes independent -> megacore sharding on v7x; default scoped
        # VMEM (32 MiB) is plenty at tile<=8192 (<10 MiB double-buffered).
        compiler_params=pltpu.CompilerParams(
            dimension_semantics=("parallel", "parallel")),
    )(src, hm, tgt, w_big, w_small)

    return out.reshape(b, 3, h, w)


# Pure-JAX reference of the same fused chain (same bf16 MXU path for Gr-hm).
def fsgan_forward_ref(img1, img2, heatmaps, raw):
    f32 = jnp.float32
    b = img1.shape[0]
    src = (2.0 * img1 - 1.0).reshape(b, 3, -1)
    tgt = (2.0 * img2 - 1.0).reshape(b, 3, -1)
    hm = heatmaps.reshape(b, heatmaps.shape[1], -1)
    grw, grb = raw["grw"], raw["grb"]
    gsw, gsb = raw["gsw"], raw["gsb"]
    giw, gib = raw["giw"], raw["gib"]
    gbw, gbb = raw["gbw"], raw["gbb"]

    reen6 = (jnp.einsum("oc,bcp->bop", grw[:, 3:].astype(jnp.bfloat16),
                        hm.astype(jnp.bfloat16), preferred_element_type=f32)
             + jnp.einsum("oc,bcp->bop", grw[:, :3], src)
             + grb[None, :, None])
    reen_img = jnp.tanh(reen6[:, 0:3])
    reen_seg = reen6[:, 3:6]
    tgt_seg = jnp.einsum("oc,bcp->bop", gsw, tgt) + gsb[None, :, None]
    face_mask = jnp.logical_and(reen_seg[:, 1:2] > reen_seg[:, 0:1],
                                reen_seg[:, 1:2] >= reen_seg[:, 2:3])
    t_mask = jnp.logical_and(tgt_seg[:, 1:2] > tgt_seg[:, 0:1],
                             tgt_seg[:, 1:2] >= tgt_seg[:, 2:3]).astype(f32)
    img_no_bg = jnp.where(face_mask, reen_img, f32(-1.0))
    completion = jnp.tanh(jnp.einsum("oc,bcp->bop", giw[:, :3], img_no_bg)
                          + giw[:, 3][None, :, None] * t_mask
                          + gib[None, :, None])
    transfer = completion * t_mask + tgt * (1.0 - t_mask)
    blend = jnp.tanh(jnp.einsum("oc,bcp->bop", gbw[:, :3], transfer)
                     + jnp.einsum("oc,bcp->bop", gbw[:, 3:6], tgt)
                     + gbw[:, 6][None, :, None] * t_mask
                     + gbb[None, :, None])
    return jnp.clip((blend + 1.0) * 0.5, 0.0, 1.0).reshape(img1.shape)


# ----------------------------------------------------------------------------
# avg_pool2d(kernel=3, stride=2, padding=1, count_include_pad=False) as two
# small separable MXU matmuls per plane (create_pyramid), gridded over N*C.
# Padding taps are edge-clipped and 1/count folded into the pooling matrices;
# all-f32 accumulation (keeps the reduce_window parity check tight).
# ----------------------------------------------------------------------------
def _avgpool_kernel(x_ref, rowm_ref, colm_ref, o_ref):
    y = jnp.dot(rowm_ref[...], x_ref[...], preferred_element_type=jnp.float32)  # (Ho, W)
    o_ref[...] = jnp.dot(y, colm_ref[...], preferred_element_type=jnp.float32)  # (Ho, Wo)


def _clipped_pool_taps(n_out, n_in):
    m = np.zeros((n_out, n_in), np.float32)
    cnt = np.zeros((n_out,), np.float32)
    for i in range(n_out):
        for t in (2 * i - 1, 2 * i, 2 * i + 1):   # window start = 2i - pad(1)
            if 0 <= t < n_in:
                m[i, t] = 1.0
                cnt[i] += 1.0
    return m, cnt


def avg_pool2d_3x3_s2(x_nchw):
    n, c, hh, ww = x_nchw.shape
    ho, wo = (hh + 1) // 2, (ww + 1) // 2
    mrow, crow = _clipped_pool_taps(ho, hh)
    mcol, ccol = _clipped_pool_taps(wo, ww)
    rowm = jnp.asarray(mrow / crow[:, None])          # (Ho, H), 1/count folded
    colm = jnp.asarray((mcol / ccol[:, None]).T)      # (W, Wo), 1/count folded
    x = x_nchw.reshape(n * c, hh, ww).astype(jnp.float32)
    # TODO(synk): at very large N*C several planes per grid step would amortize
    # the per-step overhead; one plane/step is ample for FSGAN's 4-7 channels.
    out = pl.pallas_call(
        _avgpool_kernel,
        out_shape=jax.ShapeDtypeStruct((n * c, ho, wo), jnp.float32),
        grid_spec=pltpu.PrefetchScalarGridSpec(
            num_scalar_prefetch=0,
            grid=(n * c,),
            in_specs=[
                pl.BlockSpec((None, hh, ww), lambda i: (i, 0, 0)),
                pl.BlockSpec((ho, hh), lambda i: (0, 0)),
                pl.BlockSpec((ww, wo), lambda i: (0, 0)),
            ],
            out_specs=pl.BlockSpec((None, ho, wo), lambda i: (i, 0, 0)),
        ),
        compiler_params=pltpu.CompilerParams(dimension_semantics=("parallel",)),
    )(x, rowm, colm)
    return out.reshape(n, c, ho, wo)


def create_pyramid(img, n=1):
    if isinstance(img, (list, tuple)):
        return img
    pyd = [img]
    for _ in range(n - 1):
        pyd.append(avg_pool2d_3x3_s2(pyd[-1]))
    return pyd


# ----------------------------------------------------------------------------
# Parameter init (deterministic stand-ins for the checkpointed generators),
# packed host-side: one bf16 MXU weight + one f32 small-weight slab.
# ----------------------------------------------------------------------------
def init_params(key):
    kr, ks, ki, kb = jax.random.split(key, 4)

    def conv(k, cout, cin, scale=0.1):
        kw_, kb_ = jax.random.split(k)
        return (jax.random.normal(kw_, (cout, cin), jnp.float32) * scale,
                jax.random.normal(kb_, (cout,), jnp.float32) * scale)

    grw, grb = conv(kr, 6, 71)   # Gr: image head rows 0:3 (tanh), seg head rows 3:6
    gsw, gsb = conv(ks, 3, 3)    # Gs segmentation net
    giw, gib = conv(ki, 3, 4)    # Gi inpainting net
    gbw, gbb = conv(kb, 3, 7)    # Gb blending net
    raw = dict(grw=grw, grb=grb, gsw=gsw, gsb=gsb,
               giw=giw, gib=gib, gbw=gbw, gbb=gbb)

    ws = jnp.zeros((_W_SMALL_ROWS, _W_SMALL_COLS), jnp.float32)
    ws = ws.at[:6, _C_GRW_SRC:_C_GRW_SRC + 3].set(grw[:, :3])
    ws = ws.at[:6, _C_GRB].set(grb)
    ws = ws.at[:3, _C_GSW:_C_GSW + 3].set(gsw)
    ws = ws.at[:3, _C_GSB].set(gsb)
    ws = ws.at[:3, _C_GIW_IMG:_C_GIW_IMG + 3].set(giw[:, :3])
    ws = ws.at[:3, _C_GIW_MSK].set(giw[:, 3])
    ws = ws.at[:3, _C_GIB].set(gib)
    ws = ws.at[:3, _C_GBW_TR:_C_GBW_TR + 3].set(gbw[:, :3])
    ws = ws.at[:3, _C_GBW_TGT:_C_GBW_TGT + 3].set(gbw[:, 3:6])
    ws = ws.at[:3, _C_GBW_MSK].set(gbw[:, 6])
    ws = ws.at[:3, _C_GBB].set(gbb)

    packed = dict(w_big=grw[:, 3:].astype(jnp.bfloat16), w_small=ws)
    return packed, raw


if __name__ == "__main__":
    key = jax.random.PRNGKey(0)
    k1, k2, k3, kparams = jax.random.split(key, 4)
    B = 2
    img1 = jax.random.uniform(k1, (B, 3, H, W), jnp.float32)        # source frames, [0,1]
    img2 = jax.random.uniform(k2, (B, 3, H, W), jnp.float32)        # target frames, [0,1]
    heatmaps = jax.random.uniform(k3, (B, 68, H, W), jnp.float32)   # synthetic landmark heatmaps
    params, raw = init_params(kparams)

    fwd = jax.jit(fsgan_forward)
    out = jax.block_until_ready(fwd(img1, img2, heatmaps, params))
    assert out.shape == (B, 3, H, W)
    assert bool(jnp.all(jnp.isfinite(out)))

    # Fused-chain parity vs. a pure-JAX reference using the same bf16 MXU path.
    # Rare near-tie segmentation pixels may legitimately flip the argmax mask
    # between accumulation orders, so require the overwhelming majority to agree.
    ref = fsgan_forward_ref(img1, img2, heatmaps, raw)
    frac_close = jnp.mean((jnp.abs(out - ref) <= 1e-2).astype(jnp.float32))
    assert float(frac_close) > 0.99

    # Exercise the Pyramids(2) separable avg-pool kernel on the 71-channel
    # reenactment input and check it against a reduce_window reference.
    reen_in = jnp.concatenate([2.0 * img1 - 1.0, heatmaps], axis=1)  # (B,71,H,W)
    lvl1 = jax.block_until_ready(create_pyramid(reen_in, 2)[1])
    pad = [(0, 0), (0, 0), (1, 1), (1, 1)]
    sums = jax.lax.reduce_window(reen_in, 0.0, jax.lax.add,
                                 (1, 1, 3, 3), (1, 1, 2, 2), pad)
    cnts = jax.lax.reduce_window(jnp.ones_like(reen_in), 0.0, jax.lax.add,
                                 (1, 1, 3, 3), (1, 1, 2, 2), pad)
    refp = sums / cnts
    assert lvl1.shape == (B, 71, H // 2, W // 2)
    assert bool(jnp.allclose(lvl1, refp, rtol=1e-5, atol=1e-5))

    print("KERNEL_OK")
</pallas_src>

<mosaic_0001>
module attributes {stable_mosaic.version = 11 : i64} {
  func.func @_fsgan_fused_kernel(%arg0: i32, %arg1: i32, %arg2: memref<1x3x256xf32, #tpu.memory_space<vmem>>, %arg3: memref<1x68x256xf32, #tpu.memory_space<vmem>>, %arg4: memref<1x3x256xf32, #tpu.memory_space<vmem>>, %arg5: memref<6x68xbf16, #tpu.memory_space<vmem>>, %arg6: memref<8x21xf32, #tpu.memory_space<vmem>>, %arg7: memref<1x3x256xf32, #tpu.memory_space<vmem>>) attributes {dimension_semantics = [#tpu.dimension_semantics<parallel>, #tpu.dimension_semantics<parallel>], iteration_bounds = array<i64: 2, 1>, scalar_prefetch = 0 : i64, scratch_operands = 0 : i64, tpu.core_type = #tpu.core_type<tc>, window_params = [{transform_indices = @transform_0, window_bounds = array<i64: 1, 3, 256>}, {transform_indices = @transform_1, window_bounds = array<i64: 1, 68, 256>}, {transform_indices = @transform_2, window_bounds = array<i64: 1, 3, 256>}, {pipeline_mode = #tpu.pipeline_mode<synchronous>, transform_indices = @transform_3, window_bounds = array<i64: 6, 68>}, {pipeline_mode = #tpu.pipeline_mode<synchronous>, transform_indices = @transform_4, window_bounds = array<i64: 8, 21>}, {transform_indices = @transform_5, window_bounds = array<i64: 1, 3, 256>}]} {
    %c0 = arith.constant 0 : index
    %c0_0 = arith.constant 0 : index
    %c0_1 = arith.constant 0 : index
    %0 = vector.load %arg2[%c0, %c0_0, %c0_1] : memref<1x3x256xf32, #tpu.memory_space<vmem>>, vector<1x3x256xf32>
    %1 = vector.shape_cast %0 : vector<1x3x256xf32> to vector<3x256xf32>
    %cst = arith.constant 2.000000e+00 : f32
    %2 = vector.broadcast %cst : f32 to vector<3x256xf32>
    %3 = arith.mulf %2, %1 : vector<3x256xf32>
    %cst_2 = arith.constant 1.000000e+00 : f32
    %4 = vector.broadcast %cst_2 : f32 to vector<3x256xf32>
    %5 = arith.subf %3, %4 : vector<3x256xf32>
    %c0_3 = arith.constant 0 : index
    %c0_4 = arith.constant 0 : index
    %c0_5 = arith.constant 0 : index
    %6 = vector.load %arg4[%c0_3, %c0_4, %c0_5] : memref<1x3x256xf32, #tpu.memory_space<vmem>>, vector<1x3x256xf32>
    %7 = vector.shape_cast %6 : vector<1x3x256xf32> to vector<3x256xf32>
    %cst_6 = arith.constant 2.000000e+00 : f32
    %8 = vector.broadcast %cst_6 : f32 to vector<3x256xf32>
    %9 = arith.mulf %8, %7 : vector<3x256xf32>
    %cst_7 = arith.constant 1.000000e+00 : f32
    %10 = vector.broadcast %cst_7 : f32 to vector<3x256xf32>
    %11 = arith.subf %9, %10 : vector<3x256xf32>
    %c0_8 = arith.constant 0 : index
    %c0_9 = arith.constant 0 : index
    %12 = vector.load %arg6[%c0_8, %c0_9] : memref<8x21xf32, #tpu.memory_space<vmem>>, vector<8x21xf32>
    %c0_10 = arith.constant 0 : index
    %c0_11 = arith.constant 0 : index
    %13 = vector.load %arg5[%c0_10, %c0_11] : memref<6x68xbf16, #tpu.memory_space<vmem>>, vector<6x68xbf16>
    %c0_12 = arith.constant 0 : index
    %c0_13 = arith.constant 0 : index
    %c0_14 = arith.constant 0 : index
    %14 = vector.load %arg3[%c0_12, %c0_13, %c0_14] : memref<1x68x256xf32, #tpu.memory_space<vmem>>, vector<1x68x256xf32>
    %15 = vector.shape_cast %14 : vector<1x68x256xf32> to vector<68x256xf32>
    %16 = arith.truncf %15 : vector<68x256xf32> to vector<68x256xbf16>
    %cst_15 = arith.constant dense<0.000000e+00> : vector<6x256xf32>
    %17 = tpu.matmul %13, %16, %cst_15 {dimension_numbers = #tpu.dot_dimension_numbers<[1], [0], [0], [1], [0, 0, 1, 1], [], []>} : vector<6x68xbf16>, vector<68x256xbf16>, vector<6x256xf32> -> vector<6x256xf32>
    %18 = vector.extract_strided_slice %12 {offsets = [0, 0], sizes = [6, 1], strides = [1, 1]} : vector<8x21xf32> to vector<6x1xf32>
    %19 = vector.extract_strided_slice %5 {offsets = [0, 0], sizes = [1, 256], strides = [1, 1]} : vector<3x256xf32> to vector<1x256xf32>
    %20 = vector.broadcast %18 : vector<6x1xf32> to vector<6x256xf32>
    %21 = vector.broadcast %19 : vector<1x256xf32> to vector<6x256xf32>
    %22 = arith.mulf %20, %21 : vector<6x256xf32>
    %23 = vector.extract_strided_slice %12 {offsets = [0, 1], sizes = [6, 1], strides = [1, 1]} : vector<8x21xf32> to vector<6x1xf32>
    %24 = vector.extract_strided_slice %5 {offsets = [1, 0], sizes = [1, 256], strides = [1, 1]} : vector<3x256xf32> to vector<1x256xf32>
    %25 = vector.broadcast %23 : vector<6x1xf32> to vector<6x256xf32>
    %26 = vector.broadcast %24 : vector<1x256xf32> to vector<6x256xf32>
    %27 = arith.mulf %25, %26 : vector<6x256xf32>
    %28 = arith.addf %22, %27 : vector<6x256xf32>
    %29 = vector.extract_strided_slice %12 {offsets = [0, 2], sizes = [6, 1], strides = [1, 1]} : vector<8x21xf32> to vector<6x1xf32>
    %30 = vector.extract_strided_slice %5 {offsets = [2, 0], sizes = [1, 256], strides = [1, 1]} : vector<3x256xf32> to vector<1x256xf32>
    %31 = vector.broadcast %29 : vector<6x1xf32> to vector<6x256xf32>
    %32 = vector.broadcast %30 : vector<1x256xf32> to vector<6x256xf32>
    %33 = arith.mulf %31, %32 : vector<6x256xf32>
    %34 = arith.addf %28, %33 : vector<6x256xf32>
    %35 = arith.addf %17, %34 : vector<6x256xf32>
    %36 = vector.extract_strided_slice %12 {offsets = [0, 3], sizes = [6, 1], strides = [1, 1]} : vector<8x21xf32> to vector<6x1xf32>
    %37 = vector.broadcast %36 : vector<6x1xf32> to vector<6x256xf32>
    %38 = arith.addf %35, %37 : vector<6x256xf32>
    %39 = vector.extract_strided_slice %38 {offsets = [0, 0], sizes = [3, 256], strides = [1, 1]} : vector<6x256xf32> to vector<3x256xf32>
    %40 = math.tanh %39 : vector<3x256xf32>
    %41 = vector.extract_strided_slice %38 {offsets = [3, 0], sizes = [3, 256], strides = [1, 1]} : vector<6x256xf32> to vector<3x256xf32>
    %42 = vector.extract_strided_slice %12 {offsets = [0, 4], sizes = [3, 1], strides = [1, 1]} : vector<8x21xf32> to vector<3x1xf32>
    %43 = vector.extract_strided_slice %11 {offsets = [0, 0], sizes = [1, 256], strides = [1, 1]} : vector<3x256xf32> to vector<1x256xf32>
    %44 = vector.broadcast %42 : vector<3x1xf32> to vector<3x256xf32>
    %45 = vector.broadcast %43 : vector<1x256xf32> to vector<3x256xf32>
    %46 = arith.mulf %44, %45 : vector<3x256xf32>
    %47 = vector.extract_strided_slice %12 {offsets = [0, 5], sizes = [3, 1], strides = [1, 1]} : vector<8x21xf32> to vector<3x1xf32>
    %48 = vector.extract_strided_slice %11 {offsets = [1, 0], sizes = [1, 256], strides = [1, 1]} : vector<3x256xf32> to vector<1x256xf32>
    %49 = vector.broadcast %47 : vector<3x1xf32> to vector<3x256xf32>
    %50 = vector.broadcast %48 : vector<1x256xf32> to vector<3x256xf32>
    %51 = arith.mulf %49, %50 : vector<3x256xf32>
    %52 = arith.addf %46, %51 : vector<3x256xf32>
    %53 = vector.extract_strided_slice %12 {offsets = [0, 6], sizes = [3, 1], strides = [1, 1]} : vector<8x21xf32> to vector<3x1xf32>
    %54 = vector.extract_strided_slice %11 {offsets = [2, 0], sizes = [1, 256], strides = [1, 1]} : vector<3x256xf32> to vector<1x256xf32>
    %55 = vector.broadcast %53 : vector<3x1xf32> to vector<3x256xf32>
    %56 = vector.broadcast %54 : vector<1x256xf32> to vector<3x256xf32>
    %57 = arith.mulf %55, %56 : vector<3x256xf32>
    %58 = arith.addf %52, %57 : vector<3x256xf32>
    %59 = vector.extract_strided_slice %12 {offsets = [0, 7], sizes = [3, 1], strides = [1, 1]} : vector<8x21xf32> to vector<3x1xf32>
    %60 = vector.broadcast %59 : vector<3x1xf32> to vector<3x256xf32>
    %61 = arith.addf %58, %60 : vector<3x256xf32>
    %62 = vector.extract_strided_slice %41 {offsets = [1, 0], sizes = [1, 256], strides = [1, 1]} : vector<3x256xf32> to vector<1x256xf32>
    %63 = vector.extract_strided_slice %41 {offsets = [0, 0], sizes = [1, 256], strides = [1, 1]} : vector<3x256xf32> to vector<1x256xf32>
    %64 = arith.cmpf ogt, %62, %63 : vector<1x256xf32>
    %65 = vector.extract_strided_slice %41 {offsets = [1, 0], sizes = [1, 256], strides = [1, 1]} : vector<3x256xf32> to vector<1x256xf32>
    %66 = vector.extract_strided_slice %41 {offsets = [2, 0], sizes = [1, 256], strides = [1, 1]} : vector<3x256xf32> to vector<1x256xf32>
    %67 = arith.cmpf oge, %65, %66 : vector<1x256xf32>
    %68 = arith.andi %64, %67 : vector<1x256xi1>
    %69 = vector.extract_strided_slice %61 {offsets = [1, 0], sizes = [1, 256], strides = [1, 1]} : vector<3x256xf32> to vector<1x256xf32>
    %70 = vector.extract_strided_slice %61 {offsets = [0, 0], sizes = [1, 256], strides = [1, 1]} : vector<3x256xf32> to vector<1x256xf32>
    %71 = arith.cmpf ogt, %69, %70 : vector<1x256xf32>
    %72 = vector.extract_strided_slice %61 {offsets = [1, 0], sizes = [1, 256], strides = [1, 1]} : vector<3x256xf32> to vector<1x256xf32>
    %73 = vector.extract_strided_slice %61 {offsets = [2, 0], sizes = [1, 256], strides = [1, 1]} : vector<3x256xf32> to vector<1x256xf32>
    %74 = arith.cmpf oge, %72, %73 : vector<1x256xf32>
    %75 = arith.andi %71, %74 : vector<1x256xi1>
    %76 = arith.extui %75 : vector<1x256xi1> to vector<1x256xi32>
    %77 = arith.sitofp %76 : vector<1x256xi32> to vector<1x256xf32>
    %cst_16 = arith.constant -1.000000e+00 : f32
    %78 = vector.shape_cast %68 : vector<1x256xi1> to vector<1x256xi1>
    %79 = vector.broadcast %78 : vector<1x256xi1> to vector<3x256xi1>
    %80 = vector.broadcast %cst_16 : f32 to vector<3x256xf32>
    %81 = arith.select %79, %40, %80 : vector<3x256xi1>, vector<3x256xf32>
    %82 = vector.extract_strided_slice %12 {offsets = [0, 8], sizes = [3, 1], strides = [1, 1]} : vector<8x21xf32> to vector<3x1xf32>
    %83 = vector.extract_strided_slice %81 {offsets = [0, 0], sizes = [1, 256], strides = [1, 1]} : vector<3x256xf32> to vector<1x256xf32>
    %84 = vector.broadcast %82 : vector<3x1xf32> to vector<3x256xf32>
    %85 = vector.broadcast %83 : vector<1x256xf32> to vector<3x256xf32>
    %86 = arith.mulf %84, %85 : vector<3x256xf32>
    %87 = vector.extract_strided_slice %12 {offsets = [0, 9], sizes = [3, 1], strides = [1, 1]} : vector<8x21xf32> to vector<3x1xf32>
    %88 = vector.extract_strided_slice %81 {offsets = [1, 0], sizes = [1, 256], strides = [1, 1]} : vector<3x256xf32> to vector<1x256xf32>
    %89 = vector.broadcast %87 : vector<3x1xf32> to vector<3x256xf32>
    %90 = vector.broadcast %88 : vector<1x256xf32> to vector<3x256xf32>
    %91 = arith.mulf %89, %90 : vector<3x256xf32>
    %92 = arith.addf %86, %91 : vector<3x256xf32>
    %93 = vector.extract_strided_slice %12 {offsets = [0, 10], sizes = [3, 1], strides = [1, 1]} : vector<8x21xf32> to vector<3x1xf32>
    %94 = vector.extract_strided_slice %81 {offsets = [2, 0], sizes = [1, 256], strides = [1, 1]} : vector<3x256xf32> to vector<1x256xf32>
    %95 = vector.broadcast %93 : vector<3x1xf32> to vector<3x256xf32>
    %96 = vector.broadcast %94 : vector<1x256xf32> to vector<3x256xf32>
    %97 = arith.mulf %95, %96 : vector<3x256xf32>
    %98 = arith.addf %92, %97 : vector<3x256xf32>
    %99 = vector.extract_strided_slice %12 {offsets = [0, 11], sizes = [3, 1], strides = [1, 1]} : vector<8x21xf32> to vector<3x1xf32>
    %100 = vector.broadcast %99 : vector<3x1xf32> to vector<3x256xf32>
    %101 = vector.broadcast %77 : vector<1x256xf32> to vector<3x256xf32>
    %102 = arith.mulf %100, %101 : vector<3x256xf32>
    %103 = arith.addf %98, %102 : vector<3x256xf32>
    %104 = vector.extract_strided_slice %12 {offsets = [0, 12], sizes = [3, 1], strides = [1, 1]} : vector<8x21xf32> to vector<3x1xf32>
    %105 = vector.broadcast %104 : vector<3x1xf32> to vector<3x256xf32>
    %106 = arith.addf %103, %105 : vector<3x256xf32>
    %107 = math.tanh %106 : vector<3x256xf32>
    %108 = vector.broadcast %77 : vector<1x256xf32> to vector<3x256xf32>
    %109 = arith.mulf %107, %108 : vector<3x256xf32>
    %cst_17 = arith.constant 1.000000e+00 : f32
    %110 = vector.broadcast %cst_17 : f32 to vector<1x256xf32>
    %111 = arith.subf %110, %77 : vector<1x256xf32>
    %112 = vector.broadcast %111 : vector<1x256xf32> to vector<3x256xf32>
    %113 = arith.mulf %11, %112 : vector<3x256xf32>
    %114 = arith.addf %109, %113 : vector<3x256xf32>
    %115 = vector.extract_strided_slice %12 {offsets = [0, 13], sizes = [3, 1], strides = [1, 1]} : vector<8x21xf32> to vector<3x1xf32>
    %116 = vector.extract_strided_slice %114 {offsets = [0, 0], sizes = [1, 256], strides = [1, 1]} : vector<3x256xf32> to vector<1x256xf32>
    %117 = vector.broadcast %115 : vector<3x1xf32> to vector<3x256xf32>
    %118 = vector.broadcast %116 : vector<1x256xf32> to vector<3x256xf32>
    %119 = arith.mulf %117, %118 : vector<3x256xf32>
    %120 = vector.extract_strided_slice %12 {offsets = [0, 14], sizes = [3, 1], strides = [1, 1]} : vector<8x21xf32> to vector<3x1xf32>
    %121 = vector.extract_strided_slice %114 {offsets = [1, 0], sizes = [1, 256], strides = [1, 1]} : vector<3x256xf32> to vector<1x256xf32>
    %122 = vector.broadcast %120 : vector<3x1xf32> to vector<3x256xf32>
    %123 = vector.broadcast %121 : vector<1x256xf32> to vector<3x256xf32>
    %124 = arith.mulf %122, %123 : vector<3x256xf32>
    %125 = arith.addf %119, %124 : vector<3x256xf32>
    %126 = vector.extract_strided_slice %12 {offsets = [0, 15], sizes = [3, 1], strides = [1, 1]} : vector<8x21xf32> to vector<3x1xf32>
    %127 = vector.extract_strided_slice %114 {offsets = [2, 0], sizes = [1, 256], strides = [1, 1]} : vector<3x256xf32> to vector<1x256xf32>
    %128 = vector.broadcast %126 : vector<3x1xf32> to vector<3x256xf32>
    %129 = vector.broadcast %127 : vector<1x256xf32> to vector<3x256xf32>
    %130 = arith.mulf %128, %129 : vector<3x256xf32>
    %131 = arith.addf %125, %130 : vector<3x256xf32>
    %132 = vector.extract_strided_slice %12 {offsets = [0, 16], sizes = [3, 1], strides = [1, 1]} : vector<8x21xf32> to vector<3x1xf32>
    %133 = vector.extract_strided_slice %11 {offsets = [0, 0], sizes = [1, 256], strides = [1, 1]} : vector<3x256xf32> to vector<1x256xf32>
    %134 = vector.broadcast %132 : vector<3x1xf32> to vector<3x256xf32>
    %135 = vector.broadcast %133 : vector<1x256xf32> to vector<3x256xf32>
    %136 = arith.mulf %134, %135 : vector<3x256xf32>
    %137 = vector.extract_strided_slice %12 {offsets = [0, 17], sizes = [3, 1], strides = [1, 1]} : vector<8x21xf32> to vector<3x1xf32>
    %138 = vector.extract_strided_slice %11 {offsets = [1, 0], sizes = [1, 256], strides = [1, 1]} : vector<3x256xf32> to vector<1x256xf32>
    %139 = vector.broadcast %137 : vector<3x1xf32> to vector<3x256xf32>
    %140 = vector.broadcast %138 : vector<1x256xf32> to vector<3x256xf32>
    %141 = arith.mulf %139, %140 : vector<3x256xf32>
    %142 = arith.addf %136, %141 : vector<3x256xf32>
    %143 = vector.extract_strided_slice %12 {offsets = [0, 18], sizes = [3, 1], strides = [1, 1]} : vector<8x21xf32> to vector<3x1xf32>
    %144 = vector.extract_strided_slice %11 {offsets = [2, 0], sizes = [1, 256], strides = [1, 1]} : vector<3x256xf32> to vector<1x256xf32>
    %145 = vector.broadcast %143 : vector<3x1xf32> to vector<3x256xf32>
    %146 = vector.broadcast %144 : vector<1x256xf32> to vector<3x256xf32>
    %147 = arith.mulf %145, %146 : vector<3x256xf32>
    %148 = arith.addf %142, %147 : vector<3x256xf32>
    %149 = arith.addf %131, %148 : vector<3x256xf32>
    %150 = vector.extract_strided_slice %12 {offsets = [0, 19], sizes = [3, 1], strides = [1, 1]} : vector<8x21xf32> to vector<3x1xf32>
    %151 = vector.broadcast %150 : vector<3x1xf32> to vector<3x256xf32>
    %152 = vector.broadcast %77 : vector<1x256xf32> to vector<3x256xf32>
    %153 = arith.mulf %151, %152 : vector<3x256xf32>
    %154 = arith.addf %149, %153 : vector<3x256xf32>
    %155 = vector.extract_strided_slice %12 {offsets = [0, 20], sizes = [3, 1], strides = [1, 1]} : vector<8x21xf32> to vector<3x1xf32>
    %156 = vector.broadcast %155 : vector<3x1xf32> to vector<3x256xf32>
    %157 = arith.addf %154, %156 : vector<3x256xf32>
    %158 = math.tanh %157 : vector<3x256xf32>
    %cst_18 = arith.constant 1.000000e+00 : f32
    %159 = vector.broadcast %cst_18 : f32 to vector<3x256xf32>
    %160 = arith.addf %158, %159 : vector<3x256xf32>
    %cst_19 = arith.constant 5.000000e-01 : f32
    %161 = vector.broadcast %cst_19 : f32 to vector<3x256xf32>
    %162 = arith.mulf %160, %161 : vector<3x256xf32>
    %cst_20 = arith.constant 0.000000e+00 : f32
    %cst_21 = arith.constant 1.000000e+00 : f32
    %163 = vector.broadcast %cst_20 : f32 to vector<3x256xf32>
    %164 = arith.maximumf %163, %162 : vector<3x256xf32>
    %165 = vector.broadcast %cst_21 : f32 to vector<3x256xf32>
    %166 = arith.minimumf %165, %164 : vector<3x256xf32>
    %c0_22 = arith.constant 0 : index
    %c0_23 = arith.constant 0 : index
    %c0_24 = arith.constant 0 : index
    %167 = vector.load %arg7[%c0_22, %c0_23, %c0_24] : memref<1x3x256xf32, #tpu.memory_space<vmem>>, vector<1x3x256xf32>
    %168 = vector.shape_cast %167 : vector<1x3x256xf32> to vector<3x256xf32>
    %169 = vector.shape_cast %166 : vector<3x256xf32> to vector<1x3x256xf32>
    tpu.vector_store %arg7[%c0_22, %c0_23, %c0_24], %169 {strides = array<i32>} : memref<1x3x256xf32, #tpu.memory_space<vmem>>, vector<1x3x256xf32>,
    return
  }
  func.func @transform_0(%arg0: i32, %arg1: i32) -> (i32, i32, i32) {
    %c0_i32 = arith.constant 0 : i32
    %c0_i32_0 = arith.constant 0 : i32
    return %arg0, %c0_i32, %arg1 : i32, i32, i32
  }
  func.func @transform_1(%arg0: i32, %arg1: i32) -> (i32, i32, i32) {
    %c0_i32 = arith.constant 0 : i32
    %c0_i32_0 = arith.constant 0 : i32
    return %arg0, %c0_i32, %arg1 : i32, i32, i32
  }
  func.func @transform_2(%arg0: i32, %arg1: i32) -> (i32, i32, i32) {
    %c0_i32 = arith.constant 0 : i32
    %c0_i32_0 = arith.constant 0 : i32
    return %arg0, %c0_i32, %arg1 : i32, i32, i32
  }
  func.func @transform_3(%arg0: i32, %arg1: i32) -> (i32, i32) {
    %c0_i32 = arith.constant 0 : i32
    %c0_i32_0 = arith.constant 0 : i32
    %c0_i32_1 = arith.constant 0 : i32
    return %c0_i32, %c0_i32_0 : i32, i32
  }
  func.func @transform_4(%arg0: i32, %arg1: i32) -> (i32, i32) {
    %c0_i32 = arith.constant 0 : i32
    %c0_i32_0 = arith.constant 0 : i32
    %c0_i32_1 = arith.constant 0 : i32
    return %c0_i32, %c0_i32_0 : i32, i32
  }
  func.func @transform_5(%arg0: i32, %arg1: i32) -> (i32, i32, i32) {
    %c0_i32 = arith.constant 0 : i32
    %c0_i32_0 = arith.constant 0 : i32
    return %arg0, %c0_i32, %arg1 : i32, i32, i32
  }
}

</mosaic_0001>

<bundles_post_ra>
// kernel: fsgan_forward.1
= control target key start
LH: loop header
LB: loop body
LE: loop exit
PB: predicated region body
PF: predicated region fallthrough
CT: control target
= control target key end

     0   :  { %s1003_s18 = smov 0   ;;  %s1005_s19 = smov 0   ;;  %s1146_s0 = inlined_call_operand.vmem [shape: f32[2,3,256], index: 0, kind: input, shape index: {}]   ;;  %s1147_s1 = inlined_call_operand.vmem [shape: f32[2,68,256], index: 1, kind: input, shape index: {}]   ;;  %s1148_s2 = inlined_call_operand.vmem [shape: f32[2,3,256], index: 2, kind: input, shape index: {}]   ;;  %s1149_s3 = inlined_call_operand.vmem [shape: bf16[6,68], index: 3, kind: input, shape index: {}]   ;;  %s1150_s4 = inlined_call_operand.vmem [shape: f32[8,21], index: 4, kind: input, shape index: {}]   ;;  %s1151_s5 = inlined_call_operand.vmem [shape: f32[2,3,256], index: 5, kind: output, shape index: {}]  }
   0x1   :  { %s1007_s20 = smov 0  }
   0x2 LB: > { %s27_s21 = sadd.s32 1, %s945_s19  ;;  %p827_p0 = scmp.ge.s32.totalorder %s949_s20, 1  ;;  %s949_s20 = sphi %s1007_s20, %s15_s20   ;;  %s945_s19 = sphi %s1005_s19, %s1153_s19   ;;  %s941_s18 = sphi %s1003_s18, %s1152_s18  }
   0x3   : > { %p29_p1 = scmp.ge.s32.totalorder %s27_s21, 2  ;;  %p242_p2 = scmp.lt.s32.totalorder %s949_s20, 3 }
   0x5   : > { %s1155_s21 = smov (%p29_p1, %s27_s21), 0  ;;  %p243_p3 = pnand %p827_p0, %p242_p2 }
   0x6   : > { %p297_p4 = scmp.lt.s32.totalorder (!%p243_p3), %s941_s18, 1 }
   0x7   : > { %246 = sbr.rel (%p243_p3) target bundleno = 237 (0xed), region = 40 }
   0xc   : > { %v1024_v0 = vld [vmem:[%s1150_s4] sm:$0xff]  ;;  %v951_v1 = vmov 2   ;;  %v952_v2 = vmov 0   ;;  %s1157_s18 = smov (!%p297_p4, %s941_s18), 1  ;;  %v953_v3 = vmov 4   ;;  %vm419_vm0 = vcmask 1041408  }
   0xd   : > { %895 = vset.pattern.permute.xlu1 %v951_v1  ;;  %893 = vset.pattern.permute.xlu0 %v952_v2  ;;  %s846_s24 = smul.u32 144, %s1157_s18  ;;  %v954_v12 = vmov 3   ;;  %v955_v15 = vmov 1   ;;  %v956_v22 = vmov 5   ;;  %v957_v29 = vmov 6   ;;  %s1078_s30 = sshll.u32 %s1157_s18, 3 }
   0xe   : > { %402 = vperm.xlu1 %895, %v1024_v0   ;;  %375 = vperm.xlu0 %893, %v1024_v0   ;;  %v958_v36 = vmov 8   ;;  %v959_v37 = vmov 7   ;;  %v344_v40 = vld [vmem:[%s1149_s3] sm:$0x7]  ;;  %vm415_vm1 = vcmask 556032   ;;  %v960_v41 = vmov 9   ;;  %s324_s8 = scalar_lea.vmem %s1148_s2, %s1078_s30  ;;  %s304_s11 = scalar_lea.vmem %s1146_s0, %s1078_s30 }
   0xf   : > { %897 = vset.pattern.permute.xlu2 %v953_v3  ;;  %s1036_s27 = scalar_lea.vmem %s1147_s1, %s846_s24  ;;  %v961_v42 = vmov 13   ;;  %v962_v43 = vmov 10   ;;  %v963_v44 = vmov 11   ;;  %v964_v45 = vmov 18   ;;  %v340_v53 = vld [vmem:[%s324_s8] sm:$0x77]  ;;  %s334_s14 = scalar_lea.vmem %s1151_s5, %s1078_s30 }
  0x10   : > { %461 = vperm.xlu2 %897, %v1024_v0   ;;  %v361_v4 = vld [vmem:[%s1036_s27 + $0x80] sm:$0xf]  ;;  %v362_v5 = vld [vmem:[%s1036_s27 + $0x88] sm:$0xf]  ;;  %v359_v9 = vld [vmem:[%s1036_s27 + $0x70] sm:$0xff]  ;;  %v965_v46 = vmov 12  }
  0x11   : > { %v371_v6 = vpack.c.bf16 %v361_v4, %v361_v4  ;;  %v372_v7 = vpack.c.bf16 %v362_v5, %v362_v5  ;;  %v357_v8 = vld [vmem:[%s1036_s27 + $0x60] sm:$0xff]  ;;  %v358_v10 = vld [vmem:[%s1036_s27 + $0x68] sm:$0xff]  ;;  %v360_v11 = vld [vmem:[%s1036_s27 + $0x78] sm:$0xff]  ;;  %v966_v47 = vmov 14   ;;  %v967_v48 = vmov 20  }
  0x12   : > { %v369_v16 = vpack.c.bf16 %v359_v9, %v357_v8  ;;  %v370_v17 = vpack.c.bf16 %v360_v11, %v358_v10  ;;  %v353_v18 = vld [vmem:[%s1036_s27 + $0x40] sm:$0xff]  ;;  %v355_v19 = vld [vmem:[%s1036_s27 + $0x50] sm:$0xff]  ;;  %v354_v20 = vld [vmem:[%s1036_s27 + $0x48] sm:$0xff]  ;;  %v968_v49 = vmov 16   ;;  %v969_v50 = vmov 17  }
  0x13   : > { %v421_v13 = vsel %vm419_vm0, %v371_v6, 0  ;;  %v424_v14 = vsel %vm419_vm0, %v372_v7, 0  ;;  %v356_v21 = vld [vmem:[%s1036_s27 + $0x58] sm:$0xff]  ;;  %v367_v23 = vpack.c.bf16 %v355_v19, %v353_v18  ;;  %v349_v25 = vld [vmem:[%s1036_s27 + $0x20] sm:$0xff]  ;;  %v351_v26 = vld [vmem:[%s1036_s27 + $0x30] sm:$0xff]  ;;  %v970_v51 = vmov 15  }
  0x14   : > { %429 = vmatpush.bf16.msra.mxu0 %v421_v13  ;;  %442 = vmatpush.bf16.msra.mxu1 %v424_v14  ;;  %v368_v24 = vpack.c.bf16 %v356_v21, %v354_v20  ;;  %v350_v27 = vld [vmem:[%s1036_s27 + $0x28] sm:$0xff]  ;;  %v352_v28 = vld [vmem:[%s1036_s27 + $0x38] sm:$0xff]  ;;  %v365_v30 = vpack.c.bf16 %v351_v26, %v349_v25  ;;  %v345_v32 = vld [vmem:[%s1036_s27] sm:$0xff]  ;;  %v971_v52 = vmov 19   ;;  %v341_v54 = vmul.f32 2.0, %v340_v53 }
  0x15   : > { %v366_v31 = vpack.c.bf16 %v352_v28, %v350_v27  ;;  %v347_v33 = vld [vmem:[%s1036_s27 + $0x10] sm:$0xff]  ;;  %v346_v34 = vld [vmem:[%s1036_s27 + $0x8] sm:$0xff]  ;;  %v348_v35 = vld [vmem:[%s1036_s27 + $0x18] sm:$0xff]  ;;  %vm606_vm8 = vcmask 1043456  }
  0x16   : > { %896 = vset.pattern.permute.xlu1 %v954_v12  ;;  %894 = vset.pattern.permute.xlu0 %v955_v15  ;;  %v363_v38 = vpack.c.bf16 %v347_v33, %v345_v32  ;;  %v364_v39 = vpack.c.bf16 %v348_v35, %v346_v34  ;;  %v1086_v57 = vadd.f32 -1.0, %v341_v54  ;;  %v337_v62 = vld [vmem:[%s304_s11] sm:$0x77] }
  0x17   : > { %453 = vperm.xlu1 %896, %v1024_v0   ;;  %388 = vperm.xlu0 %894, %v1024_v0   ;;  %v338_v8 = vmul.f32 2.0, %v337_v62 }
  0x18   : > { %898 = vset.pattern.permute.xlu2 %v956_v22  ;;  %430 = vmatpush.bf16.msra.mxu0 %v369_v16  ;;  %v465_v58 = vperm.slane %v1086_v57, 0  ;;  %v466_v59 = vperm.slane %v1086_v57, 4  ;;  %v477_v60 = vperm.slane %v1086_v57, 1  ;;  %v478_v61 = vperm.slane %v1086_v57, 5 }
  0x19   : > { %474 = vperm.xlu2 %898, %v1024_v0   ;;  %443 = vmatpush.bf16.msra.mxu1 %v370_v17  ;;  %v491_v6 = vperm.slane %v1086_v57, 2  ;;  %v492_v7 = vperm.slane %v1086_v57, 6  ;;  %v835_v15 = vadd.f32 -1.0, %v338_v8 }
  0x1a   : > { %v1096_v63 = vperm.slane %v465_v58, 0  ;;  %v1102_v3 = vperm.slane %v477_v60, 1  ;;  %v1104_v4 = vperm.slane %v478_v61, 1 }
  0x1b   : > { %v1112_v13 = vperm.slane %v491_v6, 2  ;;  %v1114_v14 = vperm.slane %v492_v7, 2  ;;  %v379_v22 = vperm.slane %v835_v15, 0  ;;  %v380_v26 = vperm.slane %v835_v15, 4 }
  0x1c   : > { %431 = vmatpush.bf16.msra.mxu0 %v367_v23  ;;  %v391_v27 = vperm.slane %v835_v15, 1  ;;  %v392_v28 = vperm.slane %v835_v15, 5  ;;  %v406_v32 = vperm.slane %v835_v15, 6 }
  0x1d   : > { %444 = vmatpush.bf16.msra.mxu1 %v368_v24  ;;  %v383_v33 = vperm.slane %v379_v22, 0 }
  0x1f   : > { %899 = vset.pattern.permute.xlu1 %v957_v29  ;;  %901 = vset.pattern.permute.xlu0 %v958_v36 }
  0x20   : > { %488 = vperm.xlu1 %899, %v1024_v0   ;;  %552 = vperm.xlu0 %901, %v1024_v0  }
  0x21   : > { %900 = vset.pattern.permute.xlu2 %v959_v37  ;;  %432 = vmatpush.bf16.msra.mxu0 %v365_v30 }
  0x22   : > { %502 = vperm.xlu2 %900, %v1024_v0   ;;  %445 = vmatpush.bf16.msra.mxu1 %v366_v31  ;;  %v405_v31 = vperm.slane %v835_v15, 2 }
  0x25   : > { %433 = vmatpush.bf16.msra.mxu0 %v363_v38  ;;  %v384_v38 = vperm.slane %v380_v26, 0 }
  0x26   : > { %446 = vmatpush.bf16.msra.mxu1 %v364_v39  ;;  %v395_v39 = vperm.slane %v391_v27, 1 }
  0x28   : > { %902 = vset.pattern.permute.xlu1 %v960_v41  ;;  %837 = vmatmul.msk.bf16.vlgmr.msra.gmra.mxu0 %vm415_vm1, %v344_v40 }
  0x29   : > { %560 = vperm.xlu1 %902, %v1024_v0   ;;  %906 = vset.pattern.permute.xlu0 %v961_v42  ;;  %v409_v42 = vperm.slane %v405_v31, 2 }
  0x2a   : > { %838 = vmatmul.msk.bf16.vlgmr.msra.gmra.mxu1 %vm415_vm1, %v344_v40  ;;  %619 = vperm.xlu0 %906, %v1024_v0   ;;  %v396_v40 = vperm.slane %v392_v28, 1 }
  0x2b   : > { %903 = vset.pattern.permute.xlu2 %v962_v43  ;;  %v972_v43 = vmov 0.0  }
  0x2c   : > { %570 = vperm.xlu2 %903, %v1024_v0  }
  0x31   : > { %904 = vset.pattern.permute.xlu1 %v963_v44 }
  0x32   : > { %580 = vperm.xlu1 %904, %v1024_v0   ;;  %911 = vset.pattern.permute.xlu0 %v964_v45 }
  0x33   : > { %661 = vperm.xlu0 %911, %v1024_v0  }
  0x34   : > { %905 = vset.pattern.permute.xlu2 %v965_v46 }
  0x35   : > { %590 = vperm.xlu2 %905, %v1024_v0  }
  0x3a   : > { %907 = vset.pattern.permute.xlu1 %v966_v47 }
  0x3b   : > { %627 = vperm.xlu1 %907, %v1024_v0   ;;  %914 = vset.pattern.permute.xlu0 %v967_v48 }
  0x3d   : > { %908 = vset.pattern.permute.xlu2 %v968_v49  ;;  %v410_v49 = vperm.slane %v406_v32, 2 }
  0x3e   : > { %647 = vperm.xlu2 %908, %v1024_v0  }
  0x43   : > { %909 = vset.pattern.permute.xlu1 %v969_v50 }
  0x44   : > { %653 = vperm.xlu1 %909, %v1024_v0  }
  0x46   : > { %910 = vset.pattern.permute.xlu2 %v970_v51 }
  0x47   : > { %637 = vperm.xlu2 %910, %v1024_v0  }
  0x4c   : > { %912 = vset.pattern.permute.xlu1 %v971_v52 }
  0x4d   : > { %671 = vperm.xlu1 %912, %v1024_v0  }
  0x4f   : > { %913 = vset.pattern.permute.xlu2 %v967_v48 }
  0x50   : > { %679 = vperm.xlu2 %913, %v1024_v0   ;;  %v1098_v0 = vperm.slane %v466_v59, 0 }
  0x6a   : > { %v462_v56 = vpop.permute.xlu2 %461 }
  0x6b   : > { %v471_v9 = vmul.f32 %v1096_v63, %v462_v56  ;;  %v472_v10 = vmul.f32 %v1098_v0, %v462_v56 }
  0x73   : > { %v475_v5 = vpop.permute.xlu2 %474 }
  0x74   : > { %v483_v11 = vmul.f32 %v1102_v3, %v475_v5  ;;  %v484_v12 = vmul.f32 %v1104_v4, %v475_v5 }
  0x76   : > { %v485_v17 = vadd.f32 %v483_v11, %v471_v9  ;;  %v486_v18 = vadd.f32 %v484_v12, %v472_v10 }
  0x7c   : > { %v503_v23 = vpop.permute.xlu2 %502 }
  0x80   : > { %v1084_v55 = vpop.permute.xlu1 %402  ;;  %v376_v16 = vpop.permute.xlu0 %375 }
  0x81   : > { %v385_v45 = vmul.f32 %v383_v33, %v376_v16  ;;  %v386_v50 = vmul.f32 %v384_v38, %v376_v16  ;;  %v411_v56 = vmul.f32 %v409_v42, %v1084_v55  ;;  %v412_v59 = vmul.f32 %v410_v49, %v1084_v55 }
  0x89   : > { %v1100_v1 = vpop.permute.xlu1 %453  ;;  %v389_v41 = vpop.permute.xlu0 %388 }
  0x8a   : > { %v397_v46 = vmul.f32 %v395_v39, %v389_v41  ;;  %v398_v51 = vmul.f32 %v396_v40, %v389_v41 }
  0x8c   : > { %v399_v58 = vadd.f32 %v397_v46, %v385_v45  ;;  %v400_v60 = vadd.f32 %v398_v51, %v386_v50 }
  0x8e   : > { %v413_v6 = vadd.f32 %v411_v56, %v399_v58  ;;  %v414_v8 = vadd.f32 %v412_v59, %v400_v60 }
  0x92   : > { %v489_v19 = vpop.permute.xlu1 %488  ;;  %v553_v28 = vpop.permute.xlu0 %552 }
  0x93   : > { %v497_v20 = vmul.f32 %v1112_v13, %v489_v19  ;;  %v498_v21 = vmul.f32 %v1114_v14, %v489_v19 }
  0x95   : > { %v499_v24 = vadd.f32 %v497_v20, %v485_v17  ;;  %v500_v25 = vadd.f32 %v498_v21, %v486_v18  ;;  %v571_v20 = vpop.permute.xlu2 %570 }
  0x97   : > { %v505_v29 = vadd.f32 %v503_v23, %v499_v24  ;;  %v506_v30 = vadd.f32 %v503_v23, %v500_v25 }
  0x99   : > { %v525_v34 = vrot.slane %v505_v29, 7  ;;  %v526_v35 = vrot.slane %v506_v30, 7  ;;  %v531_v36 = vrot.slane %v505_v29, 1  ;;  %v532_v37 = vrot.slane %v506_v30, 1 }
  0x9b   : > { %vm529_vm2 = vcmp.gt.f32.partialorder %v505_v29, %v525_v34  ;;  %vm530_vm3 = vcmp.gt.f32.partialorder %v506_v30, %v526_v35  ;;  %vm535_vm4 = vcmp.ge.f32.partialorder %v505_v29, %v531_v36  ;;  %vm536_vm5 = vcmp.ge.f32.partialorder %v506_v30, %v532_v37  ;;  %v561_v15 = vpop.permute.xlu1 %560 }
  0x9c   : > { %vm537_vm6 = vmand %vm529_vm2, %vm535_vm4 }
  0x9d   : > { %vm538_vm7 = vmand %vm530_vm3, %vm536_vm5  ;;  %v839_v44 = vsel %vm537_vm6, 1.0, %v972_v43  ;;  %v591_v45 = vpop.permute.xlu2 %590 }
  0x9e   : > { %v840_v47 = vsel %vm538_vm7, 1.0, %v972_v43  ;;  %v599_v48 = vsub.f32 1.0, %v839_v44  ;;  %v583_v37 = vperm.slane %v839_v44, 1  ;;  %v620_v44 = vpop.permute.xlu0 %619 }
  0x9f   : > { %v600_v52 = vsub.f32 1.0, %v840_v47 }
  0xa0   : > { %v601_v53 = vperm.slane %v599_v48, 1 }
  0xa1   : > { %v602_v54 = vperm.slane %v600_v52, 1 }
  0xa3   : > { %v605_v61 = vrot.slane %v602_v54, 4 }
  0xa4   : > { %v581_v29 = vpop.permute.xlu1 %580 }
  0xa5   : > { %v607_v62 = vsel %vm606_vm8, %v601_v53, %v605_v61  ;;  %v435_v7 = vpop.f32.mrf.mxu0  ;;  %v585_v49 = vmul.f32 %v583_v37, %v581_v29 }
  0xa6   : > { %v609_v5 = vmul.f32 %v1086_v57, %v607_v62  ;;  %v436_v9 = vadd.f32 %v435_v7, %v413_v6 }
  0xa7   : > { %v448_v10 = vpop.f32.mrf.mxu1 }
  0xa8   : > { %611 = vst [vmem:[#allocation1] ss:$2 sm:$0xff] %v609_v5  ;;  %v449_v11 = vadd.f32 %v448_v10, %v414_v8  ;;  %v456_v12 = vadd.f32 %v1100_v1, %v436_v9 }
  0xaa   : > { %v457_v16 = vadd.f32 %v1100_v1, %v449_v11  ;;  %915 = vtanh.f32 %v456_v12  ;;  %v509_v55 = vrot.slane %v456_v12, 7  ;;  %v515_v17 = vrot.slane %v456_v12, 1 }
  0xac   : > { %917 = vtanh.f32 %v457_v16  ;;  %v510_v18 = vrot.slane %v457_v16, 7  ;;  %v516_v19 = vrot.slane %v457_v16, 1  ;;  %vm513_vm9 = vcmp.gt.f32.partialorder %v456_v12, %v509_v55  ;;  %v662_v55 = vpop.permute.xlu0 %661 }
  0xad   : > { %vm519_vm10 = vcmp.ge.f32.partialorder %v456_v12, %v515_v17  ;;  %v437_v57 = vpop.f32.mrf.mxu0  ;;  %v628_v53 = vpop.permute.xlu1 %627 }
  0xae   : > { %vm514_vm11 = vcmp.gt.f32.partialorder %v457_v16, %v510_v18  ;;  %vm520_vm12 = vcmp.ge.f32.partialorder %v457_v16, %v516_v19  ;;  %vm521_vm13 = vmand %vm513_vm9, %vm519_vm10 }
  0xaf   : > { %v450_v21 = vpop.f32.mrf.mxu1  ;;  %vm522_vm14 = vmand %vm514_vm11, %vm520_vm12  ;;  %v543_v22 = vsel %vm521_vm13, 1, %v952_v2  ;;  %v612_v7 = vld.sshfl [vmem:[#allocation1] sm:$0xff pattern:$0x75316420] }
  0xb0   : > { %v544_v23 = vsel %vm522_vm14, 1, %v952_v2  ;;  %v545_v1 = vperm.slane %v543_v22, 4  ;;  %v916_v24 = vpop.eup %915  ;;  %v584_v2 = vperm.slane %v840_v47, 1  ;;  %v648_v47 = vpop.permute.xlu2 %647  ;;  %v613_v9 = vld.sshfl [vmem:[#allocation1 + $0x8] sm:$0xff pattern:$0x75316420] }
  0xb1   : > { %v546_v25 = vperm.slane %v544_v23, 4  ;;  %v650_v11 = vmul.f32 %v648_v47, %v1096_v63  ;;  %v651_v16 = vmul.f32 %v648_v47, %v1098_v0 }
  0xb2   : > { %v918_v26 = vpop.eup %917  ;;  %vm547_vm15 = vcmp.eq.s32.totalorder %v545_v1, 1  ;;  %v586_v51 = vmul.f32 %v584_v2, %v581_v29 }
  0xb3   : > { %vm548_vm0 = vcmp.eq.s32.totalorder %v546_v25, 1  ;;  %v549_v27 = vsel %vm547_vm15, %v916_v24, -1.0  ;;  %v664_v24 = vmul.f32 %v662_v55, %v1112_v13 }
  0xb4   : > { %v550_v30 = vsel %vm548_vm0, %v918_v26, -1.0  ;;  %v573_v31 = vperm.slane %v549_v27, 2  ;;  %v555_v32 = vperm.slane %v549_v27, 0  ;;  %v563_v33 = vperm.slane %v549_v27, 1 }
  0xb5   : > { %v574_v34 = vperm.slane %v550_v30, 2  ;;  %v556_v35 = vperm.slane %v550_v30, 0  ;;  %v564_v36 = vperm.slane %v550_v30, 1 }
  0xb6   : > { %v557_v38 = vmul.f32 %v555_v32, %v553_v28  ;;  %v565_v39 = vmul.f32 %v563_v33, %v561_v15  ;;  %v575_v42 = vmul.f32 %v573_v31, %v571_v20  ;;  %v654_v61 = vpop.permute.xlu1 %653 }
  0xb7   : > { %v558_v40 = vmul.f32 %v556_v35, %v553_v28  ;;  %v566_v41 = vmul.f32 %v564_v36, %v561_v15  ;;  %v576_v46 = vmul.f32 %v574_v34, %v571_v20  ;;  %v656_v8 = vmul.f32 %v654_v61, %v1102_v3 }
  0xb8   : > { %v567_v43 = vadd.f32 %v565_v39, %v557_v38  ;;  %v657_v12 = vmul.f32 %v654_v61, %v1104_v4  ;;  %v638_v21 = vpop.permute.xlu2 %637  ;;  %v665_v4 = vmul.f32 %v662_v55, %v1114_v14 }
  0xb9   : > { %v568_v48 = vadd.f32 %v566_v41, %v558_v40  ;;  %v658_v3 = vadd.f32 %v656_v8, %v650_v11 }
  0xba   : > { %v577_v50 = vadd.f32 %v575_v42, %v567_v43  ;;  %v659_v26 = vadd.f32 %v657_v12, %v651_v16 }
  0xbb   : > { %v578_v52 = vadd.f32 %v576_v46, %v568_v48  ;;  %v666_v31 = vadd.f32 %v664_v24, %v658_v3 }
  0xbc   : > { %v587_v54 = vadd.f32 %v585_v49, %v577_v50  ;;  %v667_v33 = vadd.f32 %v665_v4, %v659_v26 }
  0xbd   : > { %v588_v56 = vadd.f32 %v586_v51, %v578_v52 }
  0xbe   : > { %v593_v58 = vadd.f32 %v591_v45, %v587_v54 }
  0xbf   : > { %v594_v59 = vadd.f32 %v591_v45, %v588_v56  ;;  %v672_v28 = vpop.permute.xlu1 %671 }
  0xc0   : > { %919 = vtanh.f32 %v593_v58  ;;  %v674_v35 = vmul.f32 %v672_v28, %v583_v37  ;;  %v675_v38 = vmul.f32 %v672_v28, %v584_v2  ;;  %v680_v39 = vpop.permute.xlu2 %679 }
  0xc1   : > { %921 = vtanh.f32 %v594_v59 }
  0xc6   : > { %v920_v60 = vpop.eup %919 }
  0xc7   : > { %v922_v62 = vpop.eup %921  ;;  %v597_v5 = vmul.f32 %v920_v60, %v583_v37 }
  0xc8   : > { %v598_v6 = vmul.f32 %v922_v62, %v584_v2 }
  0xc9   : > { %v616_v10 = vadd.f32 %v612_v7, %v597_v5 }
  0xca   : > { %v617_v15 = vadd.f32 %v613_v9, %v598_v6 }
  0xcb   : > { %v622_v17 = vperm.slane %v616_v10, 0  ;;  %v630_v18 = vperm.slane %v616_v10, 1  ;;  %v640_v19 = vperm.slane %v616_v10, 2 }
  0xcc   : > { %v623_v57 = vperm.slane %v617_v15, 0  ;;  %v631_v20 = vperm.slane %v617_v15, 1  ;;  %v641_v22 = vperm.slane %v617_v15, 2 }
  0xcd   : > { %v624_v23 = vmul.f32 %v622_v17, %v620_v44  ;;  %v632_v1 = vmul.f32 %v630_v18, %v628_v53  ;;  %v642_v0 = vmul.f32 %v640_v19, %v638_v21 }
  0xce   : > { %v625_v25 = vmul.f32 %v623_v57, %v620_v44  ;;  %v633_v63 = vmul.f32 %v631_v20, %v628_v53  ;;  %v643_v30 = vmul.f32 %v641_v22, %v638_v21 }
  0xcf   : > { %v634_v27 = vadd.f32 %v632_v1, %v624_v23 }
  0xd0   : > { %v635_v29 = vadd.f32 %v633_v63, %v625_v25 }
  0xd1   : > { %v644_v32 = vadd.f32 %v642_v0, %v634_v27 }
  0xd2   : > { %v645_v34 = vadd.f32 %v643_v30, %v635_v29 }
  0xd3   : > { %v668_v36 = vadd.f32 %v666_v31, %v644_v32 }
  0xd4   : > { %v669_v40 = vadd.f32 %v667_v33, %v645_v34 }
  0xd5   : > { %v676_v13 = vadd.f32 %v674_v35, %v668_v36 }
  0xd6   : > { %v677_v41 = vadd.f32 %v675_v38, %v669_v40 }
  0xd7   : > { %v682_v42 = vadd.f32 %v680_v39, %v676_v13 }
  0xd8   : > { %v683_v43 = vadd.f32 %v680_v39, %v677_v41 }
  0xd9   : > { %923 = vtanh.f32 %v682_v42 }
  0xda   : > { %925 = vtanh.f32 %v683_v43 }
  0xdf   : > { %v924_v14 = vpop.eup %923 }
  0xe0   : > { %v926_v45 = vpop.eup %925  ;;  %v686_v46 = vadd.f32 1.0, %v924_v14 }
  0xe1   : > { %v687_v48 = vadd.f32 1.0, %v926_v45 }
  0xe2   : > { %v688_v49 = vmul.f32 0.5, %v686_v46 }
  0xe3   : > { %v689_v50 = vmul.f32 0.5, %v687_v48 }
  0xe4   : > { %v690_v51 = vmax.f32 %v688_v49, 0.0 }
  0xe5   : > { %v691_v52 = vmax.f32 %v689_v50, 0.0 }
  0xe6   : > { %v692_v2 = vmin.f32 %v690_v51, 1.0 }
  0xe7   : > { %v693_v37 = vmin.f32 %v691_v52, 1.0 }
  0xe9   : > { %v696_v53 = vrot.slane %v693_v37, 4 }
  0xeb   : > { %v697_v54 = vsel %vm606_vm8, %v692_v2, %v696_v53 }
  0xec   : > { %699 = vst [vmem:[%s334_s14] sm:$0x77] %v697_v54 }
  0xed PF: > { %s15_s20 = sadd.s32 1, %s949_s20   ;;  %s1152_s18 = smov %s945_s19 }
  0xee   : > { %p12_p5 = scmp.ge.s32.totalorder %s15_s20, 4   ;;  %s1153_s19 = smov %s1155_s21 }
  0xf0   :  { %14 = sbr.rel (!%p12_p5) target bundleno = 2 (0x2), region = 76 }

</bundles_post_ra>
